<compile_context>
chip_gen: v6e
topology: v6e:2x2x1
jax: 0.10.0
libtpu: 0.0.40
codegen_flags: <defaults>
</compile_context>

<pallas_src>
import jax
import jax.numpy as jnp
from jax.experimental import pallas as pl
from jax.experimental.pallas import tpu as pltpu

_EPS = 1e-6  # partial(nn.LayerNorm, eps=1e-06)


# ----------------------------------------------------------------------------
# ConvPosEnc: depthwise 3x3 conv + residual (optional shared_cpe of taskBlock)
# ----------------------------------------------------------------------------
def _make_cpe_kernel(H, W, tc):
    def kernel(x_ref, w_ref, b_ref, o_ref, pad_ref):
        # x_ref: (1, H, W, tc) unpadded input, w_ref: (9, tc), b_ref: (1, tc)
        # pad_ref: (H+2, W+2, tc) VMEM scratch used for the 1-pixel halo.
        pad_ref[...] = jnp.zeros((H + 2, W + 2, tc), jnp.float32)
        x = x_ref[0].astype(jnp.float32)
        pad_ref[1:H + 1, 1:W + 1, :] = x

        # Accumulator initialised with residual + bias (review item: drop the
        # separate "acc + b + center" pass).
        acc = x + b_ref[0].astype(jnp.float32)
        for t in range(9):
            di, dj = t // 3, t % 3
            acc = acc + pad_ref[di:di + H, dj:dj + W, :] * w_ref[t].astype(jnp.float32)
        o_ref[0] = acc.astype(o_ref.dtype)

    return kernel


def conv_pos_enc(x, size, weight, bias):
    """x: (B, N, C), weight: (3,3,C) (PyTorch (C,1,3,3) permuted), bias: (C,)."""
    B, N, C = x.shape
    H, W = size
    assert N == H * W
    assert weight.shape == (3, 3, C)

    feat = x.reshape(B, H, W, C)            # NHWC: channels on the lane axis
    tc = 128 if C % 128 == 0 else C          # channel tiling for big C (v7x VMEM)
    w9 = weight.reshape(9, C)
    b2 = bias.reshape(1, C)

    out = pl.pallas_call(
        _make_cpe_kernel(H, W, tc),
        out_shape=jax.ShapeDtypeStruct((B, H, W, C), x.dtype),
        grid_spec=pltpu.PrefetchScalarGridSpec(
            num_scalar_prefetch=0,
            grid=(B, C // tc),
            in_specs=[
                pl.BlockSpec((1, H, W, tc), lambda b, c: (b, 0, 0, c)),
                pl.BlockSpec((9, tc), lambda b, c: (0, c)),
                pl.BlockSpec((1, tc), lambda b, c: (0, c)),
            ],
            out_specs=pl.BlockSpec((1, H, W, tc), lambda b, c: (b, 0, 0, c)),
            scratch_shapes=[pltpu.VMEM((H + 2, W + 2, tc), jnp.float32)],
        ),
        compiler_params=pltpu.CompilerParams(
            dimension_semantics=("parallel", "parallel"),
            vmem_limit_bytes=32 * 1024 * 1024),
    )(feat, w9, b2)
    return out.reshape(B, N, C)


# ----------------------------------------------------------------------------
# LayerNorm kernels
# ----------------------------------------------------------------------------
def _make_ln_kernel(eps, fuse_residual):
    def kernel(*refs):
        if fuse_residual:
            a_ref, r_ref, g_ref, b_ref, sum_ref, y_ref = refs
            xv = a_ref[...].astype(jnp.float32) + r_ref[...].astype(jnp.float32)
            sum_ref[...] = xv.astype(sum_ref.dtype)
        else:
            a_ref, g_ref, b_ref, y_ref = refs
            xv = a_ref[...].astype(jnp.float32)
        mu = jnp.mean(xv, axis=-1, keepdims=True)
        var = jnp.mean(jnp.square(xv - mu), axis=-1, keepdims=True)
        xn = (xv - mu) * jax.lax.rsqrt(var + eps)
        y = xn * g_ref[...].astype(jnp.float32) + b_ref[...].astype(jnp.float32)
        y_ref[...] = y.astype(y_ref.dtype)

    return kernel


def layer_norm(x2d, gamma, beta, eps=_EPS):
    R, C = x2d.shape
    return pl.pallas_call(
        _make_ln_kernel(eps, fuse_residual=False),
        out_shape=jax.ShapeDtypeStruct((R, C), x2d.dtype),
        grid=(1,),
        in_specs=[pl.BlockSpec((R, C), lambda i: (0, 0)),
                  pl.BlockSpec((1, C), lambda i: (0, 0)),
                  pl.BlockSpec((1, C), lambda i: (0, 0))],
        out_specs=pl.BlockSpec((R, C), lambda i: (0, 0)),
    )(x2d, gamma.reshape(1, C), beta.reshape(1, C))


def add_layer_norm(a2d, r2d, gamma, beta, eps=_EPS):
    """Returns (a + r, LayerNorm(a + r)) — fuses the residual add into the LN pass."""
    R, C = a2d.shape
    return pl.pallas_call(
        _make_ln_kernel(eps, fuse_residual=True),
        out_shape=(jax.ShapeDtypeStruct((R, C), a2d.dtype),
                   jax.ShapeDtypeStruct((R, C), a2d.dtype)),
        grid=(1,),
        in_specs=[pl.BlockSpec((R, C), lambda i: (0, 0)),
                  pl.BlockSpec((R, C), lambda i: (0, 0)),
                  pl.BlockSpec((1, C), lambda i: (0, 0)),
                  pl.BlockSpec((1, C), lambda i: (0, 0))],
        out_specs=(pl.BlockSpec((R, C), lambda i: (0, 0)),
                   pl.BlockSpec((R, C), lambda i: (0, 0))),
    )(a2d, r2d, gamma.reshape(1, C), beta.reshape(1, C))


# ----------------------------------------------------------------------------
# Linear (fused bias, optional GELU, optional fused residual)
# ----------------------------------------------------------------------------
def _make_linear_kernel(act, has_residual):
    def kernel(*refs):
        if has_residual:
            x_ref, w_ref, b_ref, r_ref, o_ref = refs
        else:
            x_ref, w_ref, b_ref, o_ref = refs
        xv = x_ref[...].astype(jnp.float32)
        wv = w_ref[...].astype(jnp.float32)
        y = jnp.dot(xv, wv, preferred_element_type=jnp.float32)
        y = y + b_ref[...].astype(jnp.float32)
        if act == "gelu":
            # TODO(synk): torch nn.GELU defaults to the exact erf formulation;
            # using the tanh approximation here (erf has no guaranteed Mosaic lowering).
            y = jax.nn.gelu(y, approximate=True)
        if has_residual:
            y = y + r_ref[...].astype(jnp.float32)
        o_ref[...] = y.astype(o_ref.dtype)

    return kernel


def linear(x2d, w, b, act=None, residual=None):
    """y = act(x @ w + b) [+ residual].  w is (K, Nout) (PyTorch weight transposed)."""
    R, K = x2d.shape
    K2, Nout = w.shape
    assert K == K2
    in_specs = [pl.BlockSpec((R, K), lambda i: (0, 0)),
                pl.BlockSpec((K, Nout), lambda i: (0, 0)),
                pl.BlockSpec((1, Nout), lambda i: (0, 0))]
    args = [x2d, w, b.reshape(1, Nout)]
    if residual is not None:
        in_specs.append(pl.BlockSpec((R, Nout), lambda i: (0, 0)))
        args.append(residual)
    return pl.pallas_call(
        _make_linear_kernel(act, residual is not None),
        out_shape=jax.ShapeDtypeStruct((R, Nout), x2d.dtype),
        grid=(1,),
        in_specs=in_specs,
        out_specs=pl.BlockSpec((R, Nout), lambda i: (0, 0)),
    )(*args)


# ----------------------------------------------------------------------------
# Attention (one (batch, head) per grid step); also emits factor_weight[:2, 2:]
# ----------------------------------------------------------------------------
def _make_attn_kernel(scale, prompts_len):
    def kernel(q_ref, k_ref, v_ref, o_ref, raw_ref):
        q = q_ref[0].astype(jnp.float32)      # (T, Dh)
        k = k_ref[0].astype(jnp.float32)
        v = v_ref[0].astype(jnp.float32)
        # s = q @ k^T  (contract the head dim of both operands)
        s = jax.lax.dot_general(q, k, (((1,), (1,)), ((), ())),
                                preferred_element_type=jnp.float32)  # (T, T)
        # raw factor_weight slice needed by taskBlock (pre-scale logits).
        raw_ref[0] = s[:prompts_len, prompts_len:].astype(raw_ref.dtype)
        sc = s * scale
        m = jnp.max(sc, axis=-1, keepdims=True)
        p = jnp.exp(sc - m)
        att = p / jnp.sum(p, axis=-1, keepdims=True)
        o = jnp.dot(att, v, preferred_element_type=jnp.float32)
        o_ref[0] = o.astype(o_ref.dtype)

    return kernel


def attention(q, k, v, scale, prompts_len):
    BH, T, Dh = q.shape
    n_x = T - prompts_len
    out, raw = pl.pallas_call(
        _make_attn_kernel(scale, prompts_len),
        out_shape=(jax.ShapeDtypeStruct((BH, T, Dh), jnp.float32),
                   jax.ShapeDtypeStruct((BH, prompts_len, n_x), jnp.float32)),
        grid_spec=pltpu.PrefetchScalarGridSpec(
            num_scalar_prefetch=0,
            grid=(BH,),
            in_specs=[pl.BlockSpec((1, T, Dh), lambda i: (i, 0, 0))] * 3,
            out_specs=[pl.BlockSpec((1, T, Dh), lambda i: (i, 0, 0)),
                       pl.BlockSpec((1, prompts_len, n_x), lambda i: (i, 0, 0))],
        ),
        compiler_params=pltpu.CompilerParams(
            dimension_semantics=("parallel",),
            vmem_limit_bytes=32 * 1024 * 1024),
    )(q, k, v)
    return out, raw


# ----------------------------------------------------------------------------
# taskBlock forward
# ----------------------------------------------------------------------------
def task_block_forward(x, size, task_prompts, params):
    H, W = size
    B, N, C = x.shape
    assert N == H * W, "input feature has wrong size"
    prompts_len = task_prompts.shape[1]          # = 2 in the module
    num_heads = params["num_heads"]
    head_dim = C // num_heads
    scale = head_dim ** (-0.5)

    # shared_cpe (ConvPosEnc) — optional, as in the PyTorch module.
    if "cpe_w" in params:
        x = conv_pos_enc(x, size, params["cpe_w"], params["cpe_b"])

    ori_task_prompts = task_prompts

    # norm1 on prompts and tokens (same LayerNorm weights, as in the module)
    spa_prompts = layer_norm(task_prompts.reshape(B * prompts_len, C),
                             params["norm1_g"], params["norm1_b"]).reshape(B, prompts_len, C)
    shortcut = x
    cur = layer_norm(x.reshape(B * N, C),
                     params["norm1_g"], params["norm1_b"]).reshape(B, N, C)

    # TODO(synk): the channel-attention branch (token_trans / chan_q / chan_kv /
    # chan softmax) is computed in the PyTorch forward but its results never reach
    # the returned outputs, so it is omitted here (dead compute).

    # factorized attention over [prompts ; tokens]
    full = jnp.concatenate([spa_prompts, cur], axis=1)       # (B, T, C)
    T = N + prompts_len
    qkv = linear(full.reshape(B * T, C), params["qkv_w"], params["qkv_b"])
    qkv = qkv.reshape(B, T, 3, num_heads, head_dim).transpose(2, 0, 3, 1, 4)
    q = qkv[0].reshape(B * num_heads, T, head_dim)
    k = qkv[1].reshape(B * num_heads, T, head_dim)
    v = qkv[2].reshape(B * num_heads, T, head_dim)

    attn_out, raw = attention(q, k, v, scale, prompts_len)
    attn_out = (attn_out.reshape(B, num_heads, T, head_dim)
                .transpose(0, 2, 1, 3).reshape(B * T, C))
    proj_out = linear(attn_out, params["proj_w"], params["proj_b"]).reshape(B, T, C)

    spa_prompts_out = proj_out[:, :prompts_len, :]
    attn_cur = proj_out[:, prompts_len:, :]
    factor_weight = raw.reshape(B, num_heads, prompts_len, H, W)

    # x = shortcut + attn_cur ; x = x + Mlp(norm2(x))   (residual adds fused)
    x_sum, x_norm = add_layer_norm(shortcut.reshape(B * N, C),
                                   attn_cur.reshape(B * N, C),
                                   params["norm2_g"], params["norm2_b"])
    h = linear(x_norm, params["fc1_w"], params["fc1_b"], act="gelu")
    x_out = linear(h, params["fc2_w"], params["fc2_b"], residual=x_sum).reshape(B, N, C)

    # task_prompts = ori + prompts_after_attn ; += Mlp(norm2(.))
    tp_sum, tp_norm = add_layer_norm(ori_task_prompts.reshape(B * prompts_len, C),
                                     spa_prompts_out.reshape(B * prompts_len, C),
                                     params["norm2_g"], params["norm2_b"])
    ht = linear(tp_norm, params["fc1_w"], params["fc1_b"], act="gelu")
    tp_out = linear(ht, params["fc2_w"], params["fc2_b"],
                    residual=tp_sum).reshape(B, prompts_len, C)

    return x_out, factor_weight, tp_out


# ----------------------------------------------------------------------------
# Plain-JAX reference (same math / same param layout) for the correctness check
# ----------------------------------------------------------------------------
def _reference(x, size, task_prompts, params):
    H, W = size
    B, N, C = x.shape
    prompts_len = task_prompts.shape[1]
    num_heads = params["num_heads"]
    head_dim = C // num_heads
    scale = head_dim ** (-0.5)

    def ln(t, g, b):
        mu = t.mean(-1, keepdims=True)
        var = ((t - mu) ** 2).mean(-1, keepdims=True)
        return (t - mu) / jnp.sqrt(var + _EPS) * g + b

    def mlp(t):
        h = jax.nn.gelu(t @ params["fc1_w"] + params["fc1_b"], approximate=True)
        return h @ params["fc2_w"] + params["fc2_b"]

    if "cpe_w" in params:
        feat = x.reshape(B, H, W, C)
        pad = jnp.pad(feat, ((0, 0), (1, 1), (1, 1), (0, 0)))
        acc = jnp.zeros_like(feat)
        for di in range(3):
            for dj in range(3):
                acc = acc + pad[:, di:di + H, dj:dj + W, :] * params["cpe_w"][di, dj]
        x = (acc + params["cpe_b"] + feat).reshape(B, N, C)

    ori = task_prompts
    spa = ln(task_prompts, params["norm1_g"], params["norm1_b"])
    shortcut = x
    cur = ln(x, params["norm1_g"], params["norm1_b"])

    full = jnp.concatenate([spa, cur], axis=1)
    T = N + prompts_len
    qkv = (full @ params["qkv_w"] + params["qkv_b"]).reshape(
        B, T, 3, num_heads, head_dim).transpose(2, 0, 3, 1, 4)
    q, k, v = qkv[0], qkv[1], qkv[2]
    fw = jnp.einsum("bhqd,bhkd->bhqk", q, k)
    att = jax.nn.softmax(fw * scale, axis=-1)
    out = jnp.einsum("bhqk,bhkd->bhqd", att, v).transpose(0, 2, 1, 3).reshape(B, T, C)
    out = out @ params["proj_w"] + params["proj_b"]
    spa_out = out[:, :prompts_len]
    attn_cur = out[:, prompts_len:]
    factor_weight = fw[:, :, :prompts_len, prompts_len:].reshape(
        B, num_heads, prompts_len, H, W)

    x2 = shortcut + attn_cur
    x2 = x2 + mlp(ln(x2, params["norm2_g"], params["norm2_b"]))
    tp = ori + spa_out
    tp = tp + mlp(ln(tp, params["norm2_g"], params["norm2_b"]))
    return x2, factor_weight, tp


if __name__ == "__main__":
    # Small shapes consistent with the module: dim=64, heads=8, mlp_ratio=3,
    # H=W=8 (N=64), batch=2, prompts_len=2.
    B, H, W = 2, 8, 8
    N = H * W
    C = 64
    num_heads = 8
    hidden = 3 * C
    prompts_len = 2

    key = jax.random.PRNGKey(0)
    keys = jax.random.split(key, 16)

    def rnd(k, shape, s=0.1):
        return jax.random.normal(k, shape, dtype=jnp.float32) * s

    x = jax.random.normal(keys[0], (B, N, C), dtype=jnp.float32)
    task_prompts = jax.random.normal(keys[1], (B, prompts_len, C), dtype=jnp.float32)

    # NOTE: linear weights are stored as (in, out) = PyTorch weight transposed;
    # cpe weight is the PyTorch (C,1,3,3) depthwise weight permuted to (3,3,C).
    params = {
        "num_heads": num_heads,
        "cpe_w": rnd(keys[2], (3, 3, C)),
        "cpe_b": rnd(keys[3], (C,)),
        "norm1_g": 1.0 + rnd(keys[4], (C,)),
        "norm1_b": rnd(keys[5], (C,)),
        "norm2_g": 1.0 + rnd(keys[6], (C,)),
        "norm2_b": rnd(keys[7], (C,)),
        "qkv_w": rnd(keys[8], (C, 3 * C)),
        "qkv_b": rnd(keys[9], (3 * C,)),
        "proj_w": rnd(keys[10], (C, C)),
        "proj_b": rnd(keys[11], (C,)),
        "fc1_w": rnd(keys[12], (C, hidden)),
        "fc1_b": rnd(keys[13], (hidden,)),
        "fc2_w": rnd(keys[14], (hidden, C)),
        "fc2_b": rnd(keys[15], (C,)),
    }

    x_out, factor_weight, tp_out = task_block_forward(x, (H, W), task_prompts, params)
    x_out = jax.block_until_ready(x_out)
    factor_weight = jax.block_until_ready(factor_weight)
    tp_out = jax.block_until_ready(tp_out)

    x_ref, fw_ref, tp_ref = _reference(x, (H, W), task_prompts, params)

    assert x_out.shape == (B, N, C)
    assert factor_weight.shape == (B, num_heads, prompts_len, H, W)
    assert tp_out.shape == (B, prompts_len, C)
    for got, ref, name in ((x_out, x_ref, "x"),
                           (factor_weight, fw_ref, "factor_weight"),
                           (tp_out, tp_ref, "task_prompts")):
        err = jnp.max(jnp.abs(got - ref))
        assert jnp.allclose(got, ref, atol=2e-2, rtol=2e-2), f"mismatch in {name}: {err}"

    print("KERNEL_OK")
</pallas_src>

<mosaic_0001>
module attributes {stable_mosaic.version = 11 : i64} {
  func.func @kernel(%arg0: i32, %arg1: i32, %arg2: memref<1x8x8x64xf32, #tpu.memory_space<vmem>>, %arg3: memref<9x64xf32, #tpu.memory_space<vmem>>, %arg4: memref<1x64xf32, #tpu.memory_space<vmem>>, %arg5: memref<1x8x8x64xf32, #tpu.memory_space<vmem>>, %arg6: memref<10x10x64xf32, #tpu.memory_space<vmem>>) attributes {dimension_semantics = [#tpu.dimension_semantics<parallel>, #tpu.dimension_semantics<parallel>], iteration_bounds = array<i64: 2, 1>, scalar_prefetch = 0 : i64, scratch_operands = 1 : i64, tpu.core_type = #tpu.core_type<tc>, window_params = [{transform_indices = @transform_0, window_bounds = array<i64: 1, 8, 8, 64>}, {transform_indices = @transform_1, window_bounds = array<i64: 9, 64>}, {transform_indices = @transform_2, window_bounds = array<i64: 1, 64>}, {transform_indices = @transform_3, window_bounds = array<i64: 1, 8, 8, 64>}]} {
    %cst = arith.constant 0.000000e+00 : f32
    %0 = vector.broadcast %cst : f32 to vector<10x10x64xf32>
    %c0 = arith.constant 0 : index
    %c0_0 = arith.constant 0 : index
    %c0_1 = arith.constant 0 : index
    %1 = vector.load %arg6[%c0, %c0_0, %c0_1] : memref<10x10x64xf32, #tpu.memory_space<vmem>>, vector<10x10x64xf32>
    tpu.vector_store %arg6[%c0, %c0_0, %c0_1], %0 {strides = array<i32>} : memref<10x10x64xf32, #tpu.memory_space<vmem>>, vector<10x10x64xf32>,
    %c0_2 = arith.constant 0 : index
    %c0_3 = arith.constant 0 : index
    %c0_4 = arith.constant 0 : index
    %c0_5 = arith.constant 0 : index
    %2 = vector.load %arg2[%c0_2, %c0_3, %c0_4, %c0_5] : memref<1x8x8x64xf32, #tpu.memory_space<vmem>>, vector<1x8x8x64xf32>
    %3 = vector.shape_cast %2 : vector<1x8x8x64xf32> to vector<8x8x64xf32>
    %c1 = arith.constant 1 : index
    %c1_6 = arith.constant 1 : index
    %c0_7 = arith.constant 0 : index
    %4 = vector.load %arg6[%c1, %c1_6, %c0_7] : memref<10x10x64xf32, #tpu.memory_space<vmem>>, vector<8x8x64xf32>
    tpu.vector_store %arg6[%c1, %c1_6, %c0_7], %3 {strides = array<i32>} : memref<10x10x64xf32, #tpu.memory_space<vmem>>, vector<8x8x64xf32>,
    %c0_8 = arith.constant 0 : index
    %c0_9 = arith.constant 0 : index
    %5 = vector.load %arg4[%c0_8, %c0_9] : memref<1x64xf32, #tpu.memory_space<vmem>>, vector<1x64xf32>
    %6 = vector.shape_cast %5 : vector<1x64xf32> to vector<64xf32>
    %7 = vector.shape_cast %6 : vector<64xf32> to vector<1x1x64xf32>
    %8 = vector.broadcast %7 : vector<1x1x64xf32> to vector<8x8x64xf32>
    %9 = arith.addf %3, %8 : vector<8x8x64xf32>
    %c0_10 = arith.constant 0 : index
    %c0_11 = arith.constant 0 : index
    %c0_12 = arith.constant 0 : index
    %10 = vector.load %arg6[%c0_10, %c0_11, %c0_12] : memref<10x10x64xf32, #tpu.memory_space<vmem>>, vector<8x8x64xf32>
    %c0_13 = arith.constant 0 : index
    %c0_14 = arith.constant 0 : index
    %11 = vector.load %arg3[%c0_13, %c0_14] : memref<9x64xf32, #tpu.memory_space<vmem>>, vector<1x64xf32>
    %12 = vector.shape_cast %11 : vector<1x64xf32> to vector<64xf32>
    %13 = vector.shape_cast %12 : vector<64xf32> to vector<1x1x64xf32>
    %14 = vector.broadcast %13 : vector<1x1x64xf32> to vector<8x8x64xf32>
    %15 = arith.mulf %10, %14 : vector<8x8x64xf32>
    %16 = arith.addf %9, %15 : vector<8x8x64xf32>
    %c0_15 = arith.constant 0 : index
    %c1_16 = arith.constant 1 : index
    %c0_17 = arith.constant 0 : index
    %17 = vector.load %arg6[%c0_15, %c1_16, %c0_17] : memref<10x10x64xf32, #tpu.memory_space<vmem>>, vector<8x8x64xf32>
    %c1_18 = arith.constant 1 : index
    %c0_19 = arith.constant 0 : index
    %18 = vector.load %arg3[%c1_18, %c0_19] : memref<9x64xf32, #tpu.memory_space<vmem>>, vector<1x64xf32>
    %19 = vector.shape_cast %18 : vector<1x64xf32> to vector<64xf32>
    %20 = vector.shape_cast %19 : vector<64xf32> to vector<1x1x64xf32>
    %21 = vector.broadcast %20 : vector<1x1x64xf32> to vector<8x8x64xf32>
    %22 = arith.mulf %17, %21 : vector<8x8x64xf32>
    %23 = arith.addf %16, %22 : vector<8x8x64xf32>
    %c0_20 = arith.constant 0 : index
    %c2 = arith.constant 2 : index
    %c0_21 = arith.constant 0 : index
    %24 = vector.load %arg6[%c0_20, %c2, %c0_21] : memref<10x10x64xf32, #tpu.memory_space<vmem>>, vector<8x8x64xf32>
    %c2_22 = arith.constant 2 : index
    %c0_23 = arith.constant 0 : index
    %25 = vector.load %arg3[%c2_22, %c0_23] : memref<9x64xf32, #tpu.memory_space<vmem>>, vector<1x64xf32>
    %26 = vector.shape_cast %25 : vector<1x64xf32> to vector<64xf32>
    %27 = vector.shape_cast %26 : vector<64xf32> to vector<1x1x64xf32>
    %28 = vector.broadcast %27 : vector<1x1x64xf32> to vector<8x8x64xf32>
    %29 = arith.mulf %24, %28 : vector<8x8x64xf32>
    %30 = arith.addf %23, %29 : vector<8x8x64xf32>
    %c1_24 = arith.constant 1 : index
    %c0_25 = arith.constant 0 : index
    %c0_26 = arith.constant 0 : index
    %31 = vector.load %arg6[%c1_24, %c0_25, %c0_26] : memref<10x10x64xf32, #tpu.memory_space<vmem>>, vector<8x8x64xf32>
    %c3 = arith.constant 3 : index
    %c0_27 = arith.constant 0 : index
    %32 = vector.load %arg3[%c3, %c0_27] : memref<9x64xf32, #tpu.memory_space<vmem>>, vector<1x64xf32>
    %33 = vector.shape_cast %32 : vector<1x64xf32> to vector<64xf32>
    %34 = vector.shape_cast %33 : vector<64xf32> to vector<1x1x64xf32>
    %35 = vector.broadcast %34 : vector<1x1x64xf32> to vector<8x8x64xf32>
    %36 = arith.mulf %31, %35 : vector<8x8x64xf32>
    %37 = arith.addf %30, %36 : vector<8x8x64xf32>
    %c1_28 = arith.constant 1 : index
    %c1_29 = arith.constant 1 : index
    %c0_30 = arith.constant 0 : index
    %38 = vector.load %arg6[%c1_28, %c1_29, %c0_30] : memref<10x10x64xf32, #tpu.memory_space<vmem>>, vector<8x8x64xf32>
    %c4 = arith.constant 4 : index
    %c0_31 = arith.constant 0 : index
    %39 = vector.load %arg3[%c4, %c0_31] : memref<9x64xf32, #tpu.memory_space<vmem>>, vector<1x64xf32>
    %40 = vector.shape_cast %39 : vector<1x64xf32> to vector<64xf32>
    %41 = vector.shape_cast %40 : vector<64xf32> to vector<1x1x64xf32>
    %42 = vector.broadcast %41 : vector<1x1x64xf32> to vector<8x8x64xf32>
    %43 = arith.mulf %38, %42 : vector<8x8x64xf32>
    %44 = arith.addf %37, %43 : vector<8x8x64xf32>
    %c1_32 = arith.constant 1 : index
    %c2_33 = arith.constant 2 : index
    %c0_34 = arith.constant 0 : index
    %45 = vector.load %arg6[%c1_32, %c2_33, %c0_34] : memref<10x10x64xf32, #tpu.memory_space<vmem>>, vector<8x8x64xf32>
    %c5 = arith.constant 5 : index
    %c0_35 = arith.constant 0 : index
    %46 = vector.load %arg3[%c5, %c0_35] : memref<9x64xf32, #tpu.memory_space<vmem>>, vector<1x64xf32>
    %47 = vector.shape_cast %46 : vector<1x64xf32> to vector<64xf32>
    %48 = vector.shape_cast %47 : vector<64xf32> to vector<1x1x64xf32>
    %49 = vector.broadcast %48 : vector<1x1x64xf32> to vector<8x8x64xf32>
    %50 = arith.mulf %45, %49 : vector<8x8x64xf32>
    %51 = arith.addf %44, %50 : vector<8x8x64xf32>
    %c2_36 = arith.constant 2 : index
    %c0_37 = arith.constant 0 : index
    %c0_38 = arith.constant 0 : index
    %52 = vector.load %arg6[%c2_36, %c0_37, %c0_38] : memref<10x10x64xf32, #tpu.memory_space<vmem>>, vector<8x8x64xf32>
    %c6 = arith.constant 6 : index
    %c0_39 = arith.constant 0 : index
    %53 = vector.load %arg3[%c6, %c0_39] : memref<9x64xf32, #tpu.memory_space<vmem>>, vector<1x64xf32>
    %54 = vector.shape_cast %53 : vector<1x64xf32> to vector<64xf32>
    %55 = vector.shape_cast %54 : vector<64xf32> to vector<1x1x64xf32>
    %56 = vector.broadcast %55 : vector<1x1x64xf32> to vector<8x8x64xf32>
    %57 = arith.mulf %52, %56 : vector<8x8x64xf32>
    %58 = arith.addf %51, %57 : vector<8x8x64xf32>
    %c2_40 = arith.constant 2 : index
    %c1_41 = arith.constant 1 : index
    %c0_42 = arith.constant 0 : index
    %59 = vector.load %arg6[%c2_40, %c1_41, %c0_42] : memref<10x10x64xf32, #tpu.memory_space<vmem>>, vector<8x8x64xf32>
    %c7 = arith.constant 7 : index
    %c0_43 = arith.constant 0 : index
    %60 = vector.load %arg3[%c7, %c0_43] : memref<9x64xf32, #tpu.memory_space<vmem>>, vector<1x64xf32>
    %61 = vector.shape_cast %60 : vector<1x64xf32> to vector<64xf32>
    %62 = vector.shape_cast %61 : vector<64xf32> to vector<1x1x64xf32>
    %63 = vector.broadcast %62 : vector<1x1x64xf32> to vector<8x8x64xf32>
    %64 = arith.mulf %59, %63 : vector<8x8x64xf32>
    %65 = arith.addf %58, %64 : vector<8x8x64xf32>
    %c2_44 = arith.constant 2 : index
    %c2_45 = arith.constant 2 : index
    %c0_46 = arith.constant 0 : index
    %66 = vector.load %arg6[%c2_44, %c2_45, %c0_46] : memref<10x10x64xf32, #tpu.memory_space<vmem>>, vector<8x8x64xf32>
    %c8 = arith.constant 8 : index
    %c0_47 = arith.constant 0 : index
    %67 = vector.load %arg3[%c8, %c0_47] : memref<9x64xf32, #tpu.memory_space<vmem>>, vector<1x64xf32>
    %68 = vector.shape_cast %67 : vector<1x64xf32> to vector<64xf32>
    %69 = vector.shape_cast %68 : vector<64xf32> to vector<1x1x64xf32>
    %70 = vector.broadcast %69 : vector<1x1x64xf32> to vector<8x8x64xf32>
    %71 = arith.mulf %66, %70 : vector<8x8x64xf32>
    %72 = arith.addf %65, %71 : vector<8x8x64xf32>
    %c0_48 = arith.constant 0 : index
    %c0_49 = arith.constant 0 : index
    %c0_50 = arith.constant 0 : index
    %c0_51 = arith.constant 0 : index
    %73 = vector.load %arg5[%c0_48, %c0_49, %c0_50, %c0_51] : memref<1x8x8x64xf32, #tpu.memory_space<vmem>>, vector<1x8x8x64xf32>
    %74 = vector.shape_cast %73 : vector<1x8x8x64xf32> to vector<8x8x64xf32>
    %75 = vector.shape_cast %72 : vector<8x8x64xf32> to vector<1x8x8x64xf32>
    tpu.vector_store %arg5[%c0_48, %c0_49, %c0_50, %c0_51], %75 {strides = array<i32>} : memref<1x8x8x64xf32, #tpu.memory_space<vmem>>, vector<1x8x8x64xf32>,
    return
  }
  func.func @transform_0(%arg0: i32, %arg1: i32) -> (i32, i32, i32, i32) {
    %c0_i32 = arith.constant 0 : i32
    %c0_i32_0 = arith.constant 0 : i32
    %c0_i32_1 = arith.constant 0 : i32
    return %arg0, %c0_i32, %c0_i32_0, %arg1 : i32, i32, i32, i32
  }
  func.func @transform_1(%arg0: i32, %arg1: i32) -> (i32, i32) {
    %c0_i32 = arith.constant 0 : i32
    %c0_i32_0 = arith.constant 0 : i32
    return %c0_i32, %arg1 : i32, i32
  }
  func.func @transform_2(%arg0: i32, %arg1: i32) -> (i32, i32) {
    %c0_i32 = arith.constant 0 : i32
    %c0_i32_0 = arith.constant 0 : i32
    return %c0_i32, %arg1 : i32, i32
  }
  func.func @transform_3(%arg0: i32, %arg1: i32) -> (i32, i32, i32, i32) {
    %c0_i32 = arith.constant 0 : i32
    %c0_i32_0 = arith.constant 0 : i32
    %c0_i32_1 = arith.constant 0 : i32
    return %arg0, %c0_i32, %c0_i32_0, %arg1 : i32, i32, i32, i32
  }
}

</mosaic_0001>

<bundles_post_ra>
// kernel: tpu_custom_call.1
= control target key start
LH: loop header
LB: loop body
LE: loop exit
PB: predicated region body
PF: predicated region fallthrough
CT: control target
= control target key end

     0   :  { %8 = vsyncpa [#allocation4], 0  ;;  %s1404_s0 = inlined_call_operand.hbm [shape: f32[2,8,8,64], index: 0, kind: input, shape index: {}]   ;;  %s1405_s1 = inlined_call_operand.hbm [shape: f32[9,64], index: 1, kind: input, shape index: {}]   ;;  %s1406_s2 = inlined_call_operand.vmem [shape: f32[1,64], index: 2, kind: input, shape index: {}]   ;;  %s1407_s3 = inlined_call_operand.hbm [shape: f32[2,8,8,64], index: 3, kind: output, shape index: {}]  }
   0x1   :  { %10 = vsyncpa [#allocation4 + $0x1], 0 }
   0x2   :  { %11 = vsyncpa [#allocation7], 0 }
   0x3   :  { %12 = vsyncpa [#allocation5], 0 }
   0x4   :  { %14 = vsyncpa [#allocation5 + $0x1], 0  ;;  %s966_s12 = smov 0   ;;  %s968_s13 = smov 0  }
   0x5   :  { %s970_s14 = smov 0   ;;  %s972_s15 = smov 0  }
   0x6   :  { %s974_s16 = smov 0   ;;  %s976_s17 = smov 0  }
   0x7 LB: > { %s690_s18 = sadd.s32 4294967295, %s936_s17   ;;  %s691_s19 = sadd.s32 4294967294, %s936_s17   ;;  %s936_s17 = sphi %s976_s17, %s20_s17   ;;  %s932_s16 = sphi %s974_s16, %s1429_s16   ;;  %s928_s15 = sphi %s972_s15, %s1428_s15   ;;  %s924_s14 = sphi %s970_s14, %s1427_s14   ;;  %s920_s13 = sphi %s968_s13, %s1426_s13   ;;  %s916_s12 = sphi %s966_s12, %s1425_s12  }
   0x8   : > { %p54_p0 = scmp.ne.s32.totalorder %s920_s13, %s916_s12  ;;  %p1000_p1 = scmp.eq.s32.totalorder %s690_s18, 0 }
   0x9   : > { %p1004_p2 = scmp.eq.s32.totalorder %s690_s18, 1  ;;  %p138_p3 = scmp.eq.s32.totalorder %s691_s19, 1 }
   0xa   : > { %p1010_p4 = por %p1000_p1, %p54_p0  ;;  %p692_p5 = scmp.ge.s32.totalorder %s936_s17, 1 }
   0xb   : > { %p1015_p6 = por %p138_p3, %p54_p0  ;;  %p145_p7 = scmp.lt.s32.totalorder %s936_s17, 3 }
   0xc   : > { %s1413_s22 = scalar_select %p1010_p4, 1, 0 }
   0xd   : > { %s1414_s23 = scalar_select %p1015_p6, 1, 0 }
   0xe   : > { %p1020_p8 = pnand %p692_p5, %p145_p7  ;;  %s938_s25 = smov [#allocation6]  }
   0xf   : > { %s159_s26 = sshll.u32 %s938_s25, 4  ;;  %s32_s28 = sadd.s32 1, %s932_s16  ;;  %s160_s26 = int_to_ptr.vmem [resolvable:$true] %s159_s26 }
  0x10   : > { %p728_p9 = pneg %p1020_p8  ;;  %s809_s29 = scalar_lea.vmem %s160_s26, 256 }
  0x11   : > { %p810_p13 = scmp.ne.s32.totalorder %s160_s26, %s809_s29  ;;  %p817_p5 = scmp.lt.s32.totalorder %s160_s26, %s160_s26 }
  0x12   : > { %p1029_p11 = pnand %p728_p9, %p1000_p1  ;;  %p818_p7 = scmp.lt.s32.totalorder %s809_s29, %s809_s29 }
  0x14   : > { %p800_p12 = pneg %p1029_p11  ;;  %p819_p6 = por %p818_p7, %p817_p5 }
  0x16   : > { %p812_p0 = pnand %p810_p13, %p800_p12 }
  0x18   : > { %p813_p3 = pneg %p812_p0 }
  0x1a   : > { %p820_p4 = pnand %p819_p6, %p813_p3 }
  0x1c   : > { %823 = shalt.err (!%p820_p4)
}
  0x1d   : > { %s1409_s30 = smov 128   ;;  %s1410_s4 = smov 8  }
  0x1e   : > { %731 = dma.hbm_to_vmem [thread:$0]  (!%p1029_p11), %s1405_s1, 256, %s160_s26, [#allocation7], %s1409_s30, %s1409_s30, %s1410_s4  }
  0x1f   : > { %p34_p4 = scmp.ge.s32.totalorder %s32_s28, 2  ;;  %s41_s7 = sadd.s32 1, %s924_s14 }
  0x20   : > { %p48_p6 = scmp.ne.s32.totalorder %s924_s14, %s920_s13  ;;  %p49_p9 = scmp.eq.s32.totalorder %s936_s17, 0 }
  0x21   : > { %s1431_s28 = smov (%p34_p4, %s32_s28), 0  ;;  %p741_p0 = scmp.lt.s32.totalorder %s936_s17, 2 }
  0x22   : > { %p1050_p12 = por %p49_p9, %p48_p6  ;;  %p1056_p13 = por %p1004_p2, %p48_p6 }
  0x23   : > { %s36_s10 = ssub.s32 %s932_s16, %s1431_s28  ;;  %s179_s11 = sand.u32 1, %s924_s14  }
  0x24   : > { %p39_p11 = scmp.eq.s32.totalorder %s36_s10, 0  ;;  %s696_s18 = sshll.u32 %s179_s11, 6 }
  0x25   : > { %s718_s25 = sshll.u32 %s932_s16, 10  ;;  %s183_s5 = scalar_lea.vmem [#allocation3], %s696_s18 }
  0x26   : > { %s1065_s19 = scalar_select %p39_p11, %s924_s14, %s41_s7  }
  0x27   : > { %s190_s29 = scalar_lea.hbm %s1404_s0, %s718_s25  ;;  %s191_s6 = sshll.u32 %s183_s5, 4  ;;  %s192_s6 = int_to_ptr.vmem [resolvable:$true] %s191_s6 }
  0x28   : > { %p1073_p2 = pnand %p741_p0, %p1050_p12  ;;  %s180_s30 = scalar_lea.sflag [#allocation4], %s179_s11 }
  0x29   : > { %s837_s10 = scalar_lea.vmem %s192_s6, 1024  ;;  %s941_s7 = smov [#allocation3]  }
  0x2a   : > { %p826_p3 = pneg %p1073_p2  ;;  %p838_p5 = scmp.ne.s32.totalorder %s192_s6, %s837_s10 }
  0x2b   : > { %s842_s4 = sshll.u32 %s941_s7, 4  ;;  %s843_s4 = int_to_ptr.vmem [resolvable:$false] %s842_s4 }
  0x2c   : > { %p840_p7 = pnand %p838_p5, %p826_p3  ;;  %s844_s25 = scalar_lea.vmem %s843_s4, 2048 }
  0x2d   : > { %p845_p6 = scmp.lt.s32.totalorder %s192_s6, %s843_s4  ;;  %p846_p9 = scmp.lt.s32.totalorder %s844_s25, %s837_s10 }
  0x2e   : > { %p841_p4 = pneg %p840_p7 }
  0x2f   : > { %p847_p11 = por %p846_p9, %p845_p6 }
  0x31   : > { %p848_p10 = pnand %p847_p11, %p841_p4 }
  0x33   : > { %851 = shalt.err (!%p848_p10)
}
  0x34   : > { %s1420_s8 = smov 8   ;;  %s1421_s18 = smov 128  }
  0x35   : > { %735 = dma.hbm_to_vmem [thread:$0]  (!%p1073_p2), %s190_s29, 1024, %s192_s6, %s180_s30, %s1421_s18, %s1421_s18, %s1420_s8  }
  0x36   : > { %203 = sbr.rel (%p1020_p8) target bundleno = 135 (0x87), region = 32  ;;  %s1087_s11 = sand.u32 (!%p1020_p8), 1, %s920_s13  }
  0x37   : > { %s700_s4 = sshll.u32 (!%p1020_p8), %s1087_s11, 6  ;;  %s206_s26 = scalar_lea.sflag (!%p1020_p8), [#allocation4], %s1087_s11 }
  0x38   : > { %s1093_s27 = scalar_lea.vmem (!%p1020_p8), [#allocation3], %s700_s4  ;;  %p1422_p10 = scmp.ne.s32.totalorder (!%p1020_p8), %s1413_s22, 0 }
  0x3b   : > { %903 = dma.done.wait (%p1422_p10), %s206_s26, 1024  }
  0x3c   : > { %905 = vsyncadd (%p1422_p10), %s206_s26, 4294966272 }
  0x3d   : > { %907 = dma.done.wait (%p1000_p1), [#allocation7], 256  }
  0x3e   : > { %909 = vsyncadd (%p1000_p1), [#allocation7], 4294967040  ;;  %vm242_vm0 = vcmask 523264   ;;  %vm244_vm1 = vcmask 517120   ;;  %v942_v0 = vmov 0.0   ;;  %v264_v1 = vld [vmem:[%s1093_s27] sm:$0xff] }
  0x3f   : > { %243 = vst.msk [vmem:[#allocation2] sm:$0xff] %vm242_vm0, %v942_v0  ;;  %246 = vst.msk [vmem:[#allocation2 + $0x10] sm:$0xff] %vm242_vm0, %v942_v0  ;;  %v703_v2 = vld [vmem:[%s1406_s2] ss:$0 sm:$0xff]  ;;  %v1130_v7 = vld [vmem:[#allocation6 + $0x1] ss:$0 sm:$0xff] }
  0x40   : > { %248 = vst.msk [vmem:[#allocation2 + $0x20] sm:$0xff] %vm242_vm0, %v942_v0  ;;  %250 = vst.msk [vmem:[#allocation2 + $0x30] sm:$0xff] %vm242_vm0, %v942_v0  ;;  %v1127_v3 = vld [vmem:[#allocation6] ss:$0 sm:$0xff]  ;;  %v288_v4 = vadd.f32 %v703_v2, %v264_v1  ;;  %v1134_v11 = vld [vmem:[#allocation6 + $0x2] ss:$0 sm:$0xff] }
  0x41   : > { %252 = vst.msk [vmem:[#allocation2 + $0x40] sm:$0xff] %vm242_vm0, %v942_v0  ;;  %254 = vst.msk [vmem:[#allocation2 + $0x50] sm:$0xff] %vm242_vm0, %v942_v0  ;;  %v265_v12 = vld [vmem:[%s1093_s27 + $0x8] sm:$0xff]  ;;  %v266_v13 = vld [vmem:[%s1093_s27 + $0x10] sm:$0xff]  ;;  %s1292_s24 = scalar_lea.vmem [#allocation8], %s700_s4  ;;  %s719_s29 = sshll.u32 %s928_s15, 10 }
  0x42   : > { %256 = vst.msk [vmem:[#allocation2 + $0x60] sm:$0xff] %vm242_vm0, %v942_v0  ;;  %258 = vst.msk [vmem:[#allocation2 + $0x70] sm:$0xff] %vm242_vm0, %v942_v0  ;;  %v267_v14 = vld [vmem:[%s1093_s27 + $0x18] sm:$0xff]  ;;  %v268_v16 = vld [vmem:[%s1093_s27 + $0x20] sm:$0xff]  ;;  %v289_v23 = vadd.f32 %v703_v2, %v265_v12  ;;  %v290_v28 = vadd.f32 %v703_v2, %v266_v13  ;;  %s581_s30 = sshll.u32 %s1292_s24, 4  ;;  %s1352_s21 = scalar_lea.hbm %s1407_s3, %s719_s29  ;;  %s1347_s30 = int_to_ptr.vmem [resolvable:$true] %s581_s30 }
  0x43   : > { %260 = vst.msk [vmem:[#allocation2 + $0x80] sm:$0xff] %vm242_vm0, %v942_v0  ;;  %262 = vst.msk [vmem:[#allocation2 + $0x90] sm:$0xff] %vm242_vm0, %v942_v0  ;;  %v269_v17 = vld [vmem:[%s1093_s27 + $0x28] sm:$0xff]  ;;  %v270_v18 = vld [vmem:[%s1093_s27 + $0x30] sm:$0xff]  ;;  %v291_v32 = vadd.f32 %v703_v2, %v267_v14  ;;  %v292_v33 = vadd.f32 %v703_v2, %v268_v16  ;;  %s567_s15 = scalar_lea.sflag [#allocation5], %s1087_s11  ;;  %s852_s10 = scalar_lea.vmem %s1347_s30, 1024 }
  0x44   : > { %245 = vst.msk [vmem:[#allocation2 + $0x8] sm:$0x3] %vm244_vm1, %v942_v0  ;;  %247 = vst.msk [vmem:[#allocation2 + $0x18] sm:$0x3] %vm244_vm1, %v942_v0  ;;  %v271_v19 = vld [vmem:[%s1093_s27 + $0x38] sm:$0xff]  ;;  %v293_v40 = vadd.f32 %v703_v2, %v269_v17  ;;  %v294_v41 = vadd.f32 %v703_v2, %v270_v18  ;;  %p853_p1 = scmp.ne.s32.totalorder %s1347_s30, %s852_s10  ;;  %s943_s7 = smov [#allocation8]  }
  0x45   : > { %249 = vst.msk [vmem:[#allocation2 + $0x28] sm:$0x3] %vm244_vm1, %v942_v0  ;;  %251 = vst.msk [vmem:[#allocation2 + $0x38] sm:$0x3] %vm244_vm1, %v942_v0  ;;  %v1151_v22 = vld [vmem:[#allocation6 + $0x3] ss:$0 sm:$0xff]  ;;  %v295_v48 = vadd.f32 %v703_v2, %v271_v19 }
  0x46   : > { %253 = vst.msk [vmem:[#allocation2 + $0x48] sm:$0x3] %vm244_vm1, %v942_v0  ;;  %255 = vst.msk [vmem:[#allocation2 + $0x58] sm:$0x3] %vm244_vm1, %v942_v0  ;;  %v296_v5 = vld [vmem:[#allocation2] sm:$0xff]  ;;  %p854_p8 = pnand %p853_p1, %p1056_p13  ;;  %s856_s25 = sshll.u32 %s943_s7, 4  ;;  %s857_s25 = int_to_ptr.vmem [resolvable:$false] %s856_s25 }
  0x47   : > { %257 = vst.msk [vmem:[#allocation2 + $0x68] sm:$0x3] %vm244_vm1, %v942_v0  ;;  %259 = vst.msk [vmem:[#allocation2 + $0x78] sm:$0x3] %vm244_vm1, %v942_v0  ;;  %v309_v8 = vmul.f32 %v1127_v3, %v296_v5  ;;  %v1155_v34 = vld [vmem:[#allocation6 + $0x4] ss:$0 sm:$0xff]  ;;  %p859_p0 = scmp.lt.s32.totalorder %s1347_s30, %s857_s25 }
  0x48   : > { %261 = vst.msk [vmem:[#allocation2 + $0x88] sm:$0x3] %vm244_vm1, %v942_v0  ;;  %263 = vst.msk [vmem:[#allocation2 + $0x98] sm:$0x3] %vm244_vm1, %v942_v0  ;;  %v1157_v35 = vld [vmem:[#allocation6 + $0x5] ss:$0 sm:$0xff]  ;;  %p855_p12 = pneg %p854_p8 }
  0x49   : > { %273 = vst.msk [vmem:[#allocation2 + $0x11] sm:$0xff] %vm242_vm0, %v264_v1  ;;  %v317_v15 = vadd.f32 %v309_v8, %v288_v4  ;;  %274 = vst.msk [vmem:[#allocation2 + $0x21] sm:$0xff] %vm242_vm0, %v265_v12  ;;  %v1164_v42 = vld [vmem:[#allocation6 + $0x6] ss:$0 sm:$0xff]  ;;  %s858_s8 = scalar_lea.vmem %s857_s25, 2048 }
  0x4a   : > { %275 = vst.msk [vmem:[#allocation2 + $0x31] sm:$0xff] %vm242_vm0, %v266_v13  ;;  %276 = vst.msk [vmem:[#allocation2 + $0x41] sm:$0xff] %vm242_vm0, %v267_v14  ;;  %v478_v29 = vld [vmem:[#allocation2 + $0x90] sm:$0xff]  ;;  %p860_p2 = scmp.lt.s32.totalorder %s858_s8, %s852_s10 }
  0x4b   : > { %v325_v6 = vld [vmem:[#allocation2 + $0x1] sm:$0xff]  ;;  %277 = vst.msk [vmem:[#allocation2 + $0x51] sm:$0xff] %vm242_vm0, %v268_v16  ;;  %278 = vst.msk [vmem:[#allocation2 + $0x61] sm:$0xff] %vm242_vm0, %v269_v17  ;;  %v1176_v49 = vmul.f32 %v1164_v42, %v478_v29 }
  0x4c   : > { %v338_v9 = vmul.f32 %v1130_v7, %v325_v6  ;;  %v354_v10 = vld [vmem:[#allocation2 + $0x2] sm:$0xff]  ;;  %279 = vst.msk [vmem:[#allocation2 + $0x71] sm:$0xff] %vm242_vm0, %v270_v18  ;;  %280 = vst.msk [vmem:[#allocation2 + $0x81] sm:$0xff] %vm242_vm0, %v271_v19  ;;  %p861_p3 = por %p860_p2, %p859_p0 }
  0x4d   : > { %v367_v21 = vmul.f32 %v1134_v11, %v354_v10 }
  0x4e   : > { %v346_v20 = vadd.f32 %v338_v9, %v317_v15  ;;  %p862_p5 = pnand %p861_p3, %p855_p12 }
  0x50   : > { %v383_v24 = vld [vmem:[#allocation2 + $0x10] sm:$0xff]  ;;  %v375_v30 = vadd.f32 %v367_v21, %v346_v20  ;;  %v1160_v38 = vld [vmem:[#allocation2 + $0x20] sm:$0xff] }
  0x51   : > { %v326_v25 = vld [vmem:[#allocation2 + $0x11] sm:$0xff]  ;;  %v310_v26 = vmul.f32 %v1127_v3, %v383_v24  ;;  %v396_v31 = vmul.f32 %v1151_v22, %v383_v24  ;;  %v1162_v39 = vld [vmem:[#allocation2 + $0x21] sm:$0xff]  ;;  %v311_v44 = vmul.f32 %v1127_v3, %v1160_v38  ;;  %v397_v12 = vmul.f32 %v1151_v22, %v1160_v38 }
  0x52   : > { %v355_v27 = vld [vmem:[#allocation2 + $0x12] sm:$0xff]  ;;  %v339_v37 = vmul.f32 %v1130_v7, %v326_v25  ;;  %v1169_v45 = vld [vmem:[#allocation2 + $0x22] sm:$0xff]  ;;  %v425_v54 = vmul.f32 %v1155_v34, %v326_v25  ;;  %v340_v58 = vmul.f32 %v1130_v7, %v1162_v39 }
  0x53   : > { %v318_v36 = vadd.f32 %v310_v26, %v289_v23  ;;  %v368_v43 = vmul.f32 %v1134_v11, %v355_v27  ;;  %v1171_v46 = vld [vmem:[#allocation2 + $0x30] sm:$0xff]  ;;  %v1180_v52 = vld [vmem:[#allocation2 + $0x40] sm:$0xff]  ;;  %v454_v55 = vmul.f32 %v1157_v35, %v355_v27  ;;  %v404_v56 = vadd.f32 %v396_v31, %v375_v30 }
  0x54   : > { %v1173_v47 = vld [vmem:[#allocation2 + $0x31] sm:$0xff]  ;;  %v312_v51 = vmul.f32 %v1127_v3, %v1171_v46  ;;  %v1182_v53 = vld [vmem:[#allocation2 + $0x41] sm:$0xff]  ;;  %v319_v57 = vadd.f32 %v311_v44, %v290_v28  ;;  %v313_v60 = vmul.f32 %v1127_v3, %v1180_v52  ;;  %v369_v0 = vmul.f32 %v1134_v11, %v1169_v45 }
  0x55   : > { %v347_v50 = vadd.f32 %v339_v37, %v318_v36  ;;  %v1188_v59 = vld [vmem:[#allocation2 + $0x32] sm:$0xff]  ;;  %v1192_v61 = vld [vmem:[#allocation2 + $0x42] sm:$0xff]  ;;  %v341_v2 = vmul.f32 %v1130_v7, %v1173_v47  ;;  %v342_v8 = vmul.f32 %v1130_v7, %v1182_v53  ;;  %v398_v24 = vmul.f32 %v1151_v22, %v1171_v46 }
  0x56   : > { %v1194_v62 = vld [vmem:[#allocation2 + $0x50] sm:$0xff]  ;;  %v320_v1 = vadd.f32 %v312_v51, %v291_v32  ;;  %v348_v5 = vadd.f32 %v340_v58, %v319_v57  ;;  %v321_v6 = vadd.f32 %v313_v60, %v292_v33  ;;  %v1206_v10 = vld [vmem:[#allocation2 + $0x60] sm:$0xff]  ;;  %v370_v14 = vmul.f32 %v1134_v11, %v1188_v59 }
  0x57   : > { %v376_v63 = vadd.f32 %v368_v43, %v347_v50  ;;  %v1200_v4 = vld [vmem:[#allocation2 + $0x51] sm:$0xff]  ;;  %v314_v9 = vmul.f32 %v1127_v3, %v1194_v62  ;;  %v371_v15 = vmul.f32 %v1134_v11, %v1192_v61  ;;  %v1218_v21 = vld [vmem:[#allocation2 + $0x61] sm:$0xff]  ;;  %v399_v25 = vmul.f32 %v1151_v22, %v1180_v52 }
  0x58   : > { %v349_v13 = vadd.f32 %v341_v2, %v320_v1  ;;  %v377_v16 = vadd.f32 %v369_v0, %v348_v5  ;;  %v350_v17 = vadd.f32 %v342_v8, %v321_v6  ;;  %v343_v19 = vmul.f32 %v1130_v7, %v1200_v4  ;;  %v1216_v20 = vld [vmem:[#allocation2 + $0x52] sm:$0xff]  ;;  %v1230_v28 = vld [vmem:[#allocation2 + $0x62] sm:$0xff] }
  0x59   : > { %v322_v18 = vadd.f32 %v314_v9, %v293_v40  ;;  %v1220_v23 = vld [vmem:[#allocation2 + $0x70] sm:$0xff]  ;;  %v400_v26 = vmul.f32 %v1151_v22, %v1194_v62  ;;  %v315_v27 = vmul.f32 %v1127_v3, %v1206_v10  ;;  %v405_v30 = vadd.f32 %v397_v12, %v376_v63  ;;  %v1248_v0 = vld [vmem:[#allocation2 + $0x80] sm:$0xff] }
  0x5a   : > { %v1232_v29 = vld [vmem:[#allocation2 + $0x71] sm:$0xff]  ;;  %v378_v31 = vadd.f32 %v370_v14, %v349_v13  ;;  %v379_v32 = vadd.f32 %v371_v15, %v350_v17  ;;  %v372_v36 = vmul.f32 %v1134_v11, %v1216_v20  ;;  %v344_v40 = vmul.f32 %v1130_v7, %v1218_v21  ;;  %v1252_v6 = vld [vmem:[#allocation6 + $0x7] ss:$0 sm:$0xff]  ;;  %v1260_v13 = vld [vmem:[#allocation6 + $0x8] ss:$0 sm:$0xff] }
  0x5b   : > { %v351_v33 = vadd.f32 %v343_v19, %v322_v18  ;;  %v323_v37 = vadd.f32 %v315_v27, %v294_v41  ;;  %v316_v43 = vmul.f32 %v1127_v3, %v1220_v23  ;;  %v406_v44 = vadd.f32 %v398_v24, %v377_v16  ;;  %v1246_v58 = vld [vmem:[#allocation2 + $0x72] sm:$0xff] }
  0x5c   : > { %v401_v50 = vmul.f32 %v1151_v22, %v1206_v10  ;;  %v373_v51 = vmul.f32 %v1134_v11, %v1230_v28  ;;  %v345_v57 = vmul.f32 %v1130_v7, %v1232_v29  ;;  %v433_v1 = vadd.f32 %v425_v54, %v404_v56 }
  0x5d   : > { %v380_v60 = vadd.f32 %v372_v36, %v351_v33  ;;  %v352_v41 = vadd.f32 %v344_v40, %v323_v37  ;;  %v324_v63 = vadd.f32 %v316_v43, %v295_v48  ;;  %v407_v2 = vadd.f32 %v399_v25, %v378_v31 }
  0x5e   : > { %v408_v3 = vadd.f32 %v400_v26, %v379_v32  ;;  %v402_v5 = vmul.f32 %v1151_v22, %v1220_v23  ;;  %v426_v8 = vmul.f32 %v1155_v34, %v1162_v39  ;;  %v374_v7 = vmul.f32 %v1134_v11, %v1246_v58 }
  0x5f   : > { %v353_v9 = vadd.f32 %v345_v57, %v324_v63  ;;  %v462_v12 = vadd.f32 %v454_v55, %v433_v1  ;;  %v484_v48 = vmul.f32 %v1164_v42, %v1160_v38  ;;  %v381_v54 = vadd.f32 %v373_v51, %v352_v41 }
  0x60   : > { %v403_v56 = vmul.f32 %v1151_v22, %v1248_v0  ;;  %v434_v14 = vadd.f32 %v426_v8, %v405_v30  ;;  %v455_v15 = vmul.f32 %v1157_v35, %v1169_v45  ;;  %v409_v16 = vadd.f32 %v401_v50, %v380_v60 }
  0x61   : > { %v492_v17 = vadd.f32 %v484_v48, %v462_v12  ;;  %v513_v18 = vmul.f32 %v1252_v6, %v1162_v39  ;;  %v427_v11 = vmul.f32 %v1155_v34, %v1173_v47  ;;  %v542_v38 = vmul.f32 %v1260_v13, %v1169_v45 }
  0x62   : > { %v463_v55 = vadd.f32 %v455_v15, %v434_v14  ;;  %v485_v19 = vmul.f32 %v1164_v42, %v1171_v46  ;;  %v514_v22 = vmul.f32 %v1252_v6, %v1173_v47  ;;  %v382_v24 = vadd.f32 %v374_v7, %v353_v9  ;;  %v506_v9 = vld [vmem:[#allocation2 + $0x81] sm:$0xff] }
  0x63   : > { %v521_v25 = vadd.f32 %v513_v18, %v492_v17  ;;  %v435_v26 = vadd.f32 %v427_v11, %v406_v44  ;;  %v456_v39 = vmul.f32 %v1157_v35, %v1188_v59  ;;  %v410_v27 = vadd.f32 %v402_v5, %v381_v54  ;;  %v535_v14 = vld [vmem:[#allocation2 + $0x82] sm:$0xff] }
  0x64   : > { %v493_v30 = vadd.f32 %v485_v19, %v463_v55  ;;  %v543_v31 = vmul.f32 %v1260_v13, %v1188_v59  ;;  %v428_v45 = vmul.f32 %v1155_v34, %v1182_v53  ;;  %v486_v47 = vmul.f32 %v1164_v42, %v1180_v52 }
  0x65   : > { %v550_v32 = vadd.f32 %v542_v38, %v521_v25  ;;  %v464_v46 = vadd.f32 %v456_v39, %v435_v26  ;;  %v515_v33 = vmul.f32 %v1252_v6, %v1182_v53  ;;  %v457_v40 = vmul.f32 %v1157_v35, %v1192_v61  ;;  %v507_v25 = vld [vmem:[#allocation2 + $0x91] sm:$0xff] }
  0x66   : > { %v522_v36 = vadd.f32 %v514_v22, %v493_v30  ;;  %v436_v37 = vadd.f32 %v428_v45, %v407_v2  ;;  %v429_v43 = vmul.f32 %v1155_v34, %v1200_v4  ;;  %v411_v59 = vadd.f32 %v403_v56, %v382_v24 }
  0x67   : > { %558 = vst.msk [vmem:[%s1292_s24] sm:$0xff] %vm242_vm0, %v550_v32  ;;  %v494_v52 = vadd.f32 %v486_v47, %v464_v46  ;;  %v487_v53 = vmul.f32 %v1164_v42, %v1194_v62  ;;  %v458_v44 = vmul.f32 %v1157_v35, %v1216_v20  ;;  %v430_v60 = vmul.f32 %v1155_v34, %v1218_v21 }
  0x68   : > { %v551_v50 = vadd.f32 %v543_v31, %v522_v36  ;;  %v465_v51 = vadd.f32 %v457_v40, %v436_v37  ;;  %v437_v57 = vadd.f32 %v429_v43, %v408_v3  ;;  %v544_v63 = vmul.f32 %v1260_v13, %v1192_v61 }
  0x69   : > { %v523_v41 = vadd.f32 %v515_v33, %v494_v52  ;;  %v516_v1 = vmul.f32 %v1252_v6, %v1200_v4  ;;  %v488_v2 = vmul.f32 %v1164_v42, %v1206_v10  ;;  %v438_v8 = vadd.f32 %v430_v60, %v409_v16 }
  0x6a   : > { %559 = vst.msk [vmem:[%s1292_s24 + $0x8] sm:$0xff] %vm242_vm0, %v551_v50  ;;  %v495_v62 = vadd.f32 %v487_v53, %v465_v51  ;;  %v466_v5 = vadd.f32 %v458_v44, %v437_v57  ;;  %v459_v3 = vmul.f32 %v1157_v35, %v1230_v28  ;;  %v545_v61 = vmul.f32 %v1260_v13, %v1216_v20 }
  0x6b   : > { %v552_v7 = vadd.f32 %v544_v63, %v523_v41  ;;  %v517_v4 = vmul.f32 %v1252_v6, %v1218_v21  ;;  %v431_v10 = vmul.f32 %v1155_v34, %v1232_v29  ;;  %v489_v56 = vmul.f32 %v1164_v42, %v1220_v23 }
  0x6c   : > { %v524_v12 = vadd.f32 %v516_v1, %v495_v62  ;;  %v496_v48 = vadd.f32 %v488_v2, %v466_v5  ;;  %v467_v54 = vadd.f32 %v459_v3, %v438_v8  ;;  %v546_v15 = vmul.f32 %v1260_v13, %v1230_v28 }
  0x6d   : > { %560 = vst.msk [vmem:[%s1292_s24 + $0x10] sm:$0xff] %vm242_vm0, %v552_v7  ;;  %v439_v20 = vadd.f32 %v431_v10, %v410_v27  ;;  %v460_v21 = vmul.f32 %v1157_v35, %v1246_v58  ;;  %v432_v16 = vmul.f32 %v1155_v34, %v506_v9  ;;  %v518_v38 = vmul.f32 %v1252_v6, %v1232_v29 }
  0x6e   : > { %v553_v17 = vadd.f32 %v545_v61, %v524_v12  ;;  %v525_v18 = vadd.f32 %v517_v4, %v496_v48  ;;  %v497_v11 = vadd.f32 %v489_v56, %v467_v54  ;;  %v490_v55 = vmul.f32 %v1164_v42, %v1248_v0 }
  0x6f   : > { %v468_v23 = vadd.f32 %v460_v21, %v439_v20  ;;  %v440_v19 = vadd.f32 %v432_v16, %v411_v59  ;;  %v461_v28 = vmul.f32 %v1157_v35, %v535_v14  ;;  %v547_v24 = vmul.f32 %v1260_v13, %v1246_v58  ;;  %v536_v35 = vld [vmem:[#allocation2 + $0x92] sm:$0xff] }
  0x70   : > { %561 = vst.msk [vmem:[%s1292_s24 + $0x18] sm:$0xff] %vm242_vm0, %v553_v17  ;;  %v554_v22 = vadd.f32 %v546_v15, %v525_v18  ;;  %v526_v34 = vadd.f32 %v518_v38, %v497_v11  ;;  %v519_v29 = vmul.f32 %v1252_v6, %v506_v9  ;;  %v548_v27 = vmul.f32 %v1260_v13, %v535_v14 }
  0x71   : > { %v498_v26 = vadd.f32 %v490_v55, %v468_v23  ;;  %v469_v39 = vadd.f32 %v461_v28, %v440_v19  ;;  %v520_v58 = vmul.f32 %v1252_v6, %v507_v25  ;;  %v549_v32 = vmul.f32 %v1260_v13, %v536_v35 }
  0x72   : > { %562 = vst.msk [vmem:[%s1292_s24 + $0x20] sm:$0xff] %vm242_vm0, %v554_v22  ;;  %v555_v42 = vadd.f32 %v547_v24, %v526_v34 }
  0x73   : > { %v527_v0 = vadd.f32 %v519_v29, %v498_v26  ;;  %v499_v30 = vadd.f32 %v1176_v49, %v469_v39 }
  0x74   : > { %563 = vst.msk [vmem:[%s1292_s24 + $0x28] sm:$0xff] %vm242_vm0, %v555_v42 }
  0x75   : > { %v556_v31 = vadd.f32 %v548_v27, %v527_v0  ;;  %v528_v45 = vadd.f32 %v520_v58, %v499_v30 }
  0x77   : > { %564 = vst.msk [vmem:[%s1292_s24 + $0x30] sm:$0xff] %vm242_vm0, %v556_v31  ;;  %v557_v49 = vadd.f32 %v549_v32, %v528_v45 }
  0x79   : > { %565 = vst.msk [vmem:[%s1292_s24 + $0x38] sm:$0xff] %vm242_vm0, %v557_v49 }
  0x7a   : > { %865 = shalt.err (!%p862_p5)
}
  0x7b   : > { %s866_s18 = scalar_lea.hbm %s1352_s21, 1024  ;;  %s870_s27 = scalar_lea.hbm %s1407_s3, 2048 }
  0x7c   : > { %p867_p7 = scmp.ne.s32.totalorder %s1352_s21, %s866_s18  ;;  %p871_p9 = scmp.lt.s32.totalorder %s1352_s21, %s1407_s3 }
  0x7d   : > { %p872_p11 = scmp.lt.s32.totalorder %s870_s27, %s866_s18 }
  0x7e   : > { %p868_p4 = pnand %p867_p7, %p1056_p13 }
  0x7f   : > { %p873_p10 = por %p872_p11, %p871_p9 }
  0x80   : > { %p869_p6 = pneg %p868_p4 }
  0x82   : > { %p874_p1 = pnand %p873_p10, %p869_p6 }
  0x84   : > { %877 = shalt.err (!%p874_p1)
}
  0x85   : > { %s944_s24 = smov 128   ;;  %s945_s29 = smov 8  }
  0x86   : > { %726 = dma.vmem_to_hbm [thread:$0]  (%p1056_p13), %s1347_s30, 1024, %s1352_s21, %s567_s15, %s944_s24, %s944_s24, %s945_s29  }
  0x87 PF: > { %s596_s5 = sand.u32 1, %s916_s12   ;;  %p1423_p8 = scmp.ne.s32.totalorder %s1414_s23, 0 }
  0x88   : > { %p1424_p12 = scmp.ge.s32.totalorder %s936_s17, 2  ;;  %s597_s6 = scalar_lea.sflag [#allocation5], %s596_s5 }
  0x8a   : > { %p737_p0 = pnand %p1424_p12, %p1423_p8 }
  0x8c   : > { %p738_p2 = pneg %p737_p0 }
  0x8e   : > { %911 = dma.done.wait (%p738_p2), %s597_s6, 1024  }
  0x8f   : > { %913 = vsyncadd (%p738_p2), %s597_s6, 4294966272  ;;  %s20_s17 = sadd.s32 1, %s936_s17   ;;  %s1425_s12 = smov %s920_s13 }
  0x90   : > { %p17_p3 = scmp.ge.s32.totalorder %s20_s17, 4   ;;  %s1426_s13 = smov %s924_s14 }
  0x91   : > { %s1427_s14 = smov %s1065_s19  ;;  %s1428_s15 = smov %s932_s16 }
  0x92   : > { %s1429_s16 = smov %s1431_s28  ;;  %19 = sbr.rel (!%p17_p3) target bundleno = 7 (0x7), region = 87 }
  0x97   :  { %602 = vsyncpa [#allocation4], 1 }
  0x98   :  { %604 = vsyncpa [#allocation4 + $0x1], 1 }
  0x99   :  { %605 = vsyncpa [#allocation7], 1 }
  0x9a   :  { %606 = vsyncpa [#allocation5], 1 }
  0x9b   :  { %608 = vsyncpa [#allocation5 + $0x1], 1 }

</bundles_post_ra>
